<compile_context>
chip_gen: v7x
topology: tpu7x:2x2x1
jax: 0.10.0
libtpu: 0.0.40
codegen_flags: <defaults>
</compile_context>

<pallas_src>
import functools

import jax
import jax.numpy as jnp
import numpy as np
from jax.experimental import pallas as pl
from jax.experimental.pallas import tpu as pltpu


# ---------------------------------------------------------------------------
# Kernels
# ---------------------------------------------------------------------------

def _squeeze_kernel(x_ref, mean_ref, *, inv_hw):
    """Accumulate spatial sums over HW tiles; scale to the mean on the last tile.

    x_ref:    (1, tile_hw, C)   current activation tile
    mean_ref: (1, 1, C) f32     resident accumulator (same block across the hw axis)
    """
    h = pl.program_id(1)

    @pl.when(h == 0)
    def _():
        mean_ref[...] = jnp.zeros_like(mean_ref)

    mean_ref[...] += jnp.sum(x_ref[...].astype(jnp.float32), axis=1, keepdims=True)

    @pl.when(h == pl.num_programs(1) - 1)
    def _():
        mean_ref[...] *= inv_hw


def _gate_kernel(msar_ref, mopt_ref,
                 wss_ref, wso_ref, bsq_ref,
                 wsar_ref, bsar_ref, wopt_ref, bopt_ref,
                 gsar_ref, gopt_ref):
    """Whole-batch squeeze-excitation MLP. All operands are small and 2-D.

    msar: (B, Cs)  mopt: (B, Co)
    gsar: (B, Cs)  gopt: (B, Co)
    """
    # Two partial dots instead of concatenating [msar, mopt] along channels.
    excit = (jnp.dot(msar_ref[...], wss_ref[...], preferred_element_type=jnp.float32)
             + jnp.dot(mopt_ref[...], wso_ref[...], preferred_element_type=jnp.float32)
             + bsq_ref[...])
    excit = jnp.maximum(excit, 0.0)

    gsar_ref[...] = jax.nn.sigmoid(
        jnp.dot(excit, wsar_ref[...], preferred_element_type=jnp.float32)
        + bsar_ref[...])
    gopt_ref[...] = jax.nn.sigmoid(
        jnp.dot(excit, wopt_ref[...], preferred_element_type=jnp.float32)
        + bopt_ref[...])


def _apply_kernel(x_ref, g_ref, o_ref):
    """Elementwise per-channel gating.

    x_ref: (1, tile_hw, C), g_ref: (1, 1, C) f32, o_ref: (1, tile_hw, C)
    """
    o_ref[...] = (x_ref[...].astype(jnp.float32) * g_ref[...]).astype(o_ref.dtype)


# ---------------------------------------------------------------------------
# Tiling / VMEM helpers
# ---------------------------------------------------------------------------

def _choose_hw_tile(hw, channels, itemsize, target_bytes=4 << 20):
    """Largest multiple-of-8 divisor of hw whose (tile, C) block is ~<= target."""
    if hw * channels * itemsize <= target_bytes:
        return hw
    max_tile = max(8, int(target_bytes // (channels * itemsize)) // 8 * 8)
    t = min(max_tile, (hw // 8) * 8)
    while t >= 8:
        if hw % t == 0:
            return t
        t -= 8
    # No 8-aligned divisor <= target; fall back to the full (untiled) spatial axis.
    return hw


def _vmem_limit_bytes(*block_bytes):
    """Double-buffered pipeline blocks + headroom, clamped to be v7x-safe."""
    need = 2 * sum(int(b) for b in block_bytes) + (4 << 20)
    return int(min(64 << 20, max(32 << 20, need)))


# ---------------------------------------------------------------------------
# Pallas-call wrappers
# ---------------------------------------------------------------------------

def _spatial_mean(x, tile_hw):
    """x: (B, HW, C)  ->  per-channel spatial mean (B, 1, C) f32."""
    B, HW, C = x.shape
    assert HW % tile_hw == 0
    n_hw = HW // tile_hw
    isz = jnp.dtype(x.dtype).itemsize

    return pl.pallas_call(
        functools.partial(_squeeze_kernel, inv_hw=1.0 / HW),
        out_shape=jax.ShapeDtypeStruct((B, 1, C), jnp.float32),
        grid_spec=pltpu.PrefetchScalarGridSpec(
            num_scalar_prefetch=0,
            grid=(B, n_hw),
            in_specs=[pl.BlockSpec((1, tile_hw, C), lambda b, h: (b, h, 0))],
            out_specs=pl.BlockSpec((1, 1, C), lambda b, h: (b, 0, 0)),
        ),
        compiler_params=pltpu.CompilerParams(
            dimension_semantics=("parallel", "arbitrary"),
            vmem_limit_bytes=_vmem_limit_bytes(tile_hw * C * isz, C * 4),
        ),
    )(x)


def _apply_gate(x, gate, tile_hw):
    """x: (B, HW, C), gate: (B, 1, C) f32  ->  x * gate (broadcast over HW)."""
    B, HW, C = x.shape
    assert HW % tile_hw == 0
    n_hw = HW // tile_hw
    isz = jnp.dtype(x.dtype).itemsize

    return pl.pallas_call(
        _apply_kernel,
        out_shape=jax.ShapeDtypeStruct((B, HW, C), x.dtype),
        grid_spec=pltpu.PrefetchScalarGridSpec(
            num_scalar_prefetch=0,
            grid=(B, n_hw),
            in_specs=[
                pl.BlockSpec((1, tile_hw, C), lambda b, h: (b, h, 0)),
                pl.BlockSpec((1, 1, C), lambda b, h: (b, 0, 0)),
            ],
            out_specs=pl.BlockSpec((1, tile_hw, C), lambda b, h: (b, h, 0)),
        ),
        compiler_params=pltpu.CompilerParams(
            dimension_semantics=("parallel", "parallel"),
            vmem_limit_bytes=_vmem_limit_bytes(
                2 * tile_hw * C * isz, C * 4),
        ),
    )(x, gate)


def mmtm_forward(sar, optical, params):
    """sar: (B, Cs, H, W), optical: (B, Co, H, W). Returns gated (same shapes)."""
    B, Cs, H, W = sar.shape
    _, Co, Ho, Wo = optical.shape
    HW_s, HW_o = H * W, Ho * Wo

    # Lane-dense layout: channels on lanes, spatial on sublanes.
    sar_f = sar.reshape(B, Cs, HW_s).transpose(0, 2, 1)        # (B, HW_s, Cs)
    opt_f = optical.reshape(B, Co, HW_o).transpose(0, 2, 1)    # (B, HW_o, Co)

    t_s = _choose_hw_tile(HW_s, Cs, jnp.dtype(sar.dtype).itemsize)
    t_o = _choose_hw_tile(HW_o, Co, jnp.dtype(optical.dtype).itemsize)

    # 1) Streaming spatial means (read-only pass).
    mean_sar = _spatial_mean(sar_f, t_s).reshape(B, Cs)
    mean_opt = _spatial_mean(opt_f, t_o).reshape(B, Co)

    # 2) Whole-batch gate MLP (tiny; single grid step, M = B).
    w_sq_sar = params["w_squeeze"][:Cs, :]
    w_sq_opt = params["w_squeeze"][Cs:, :]
    gate_sar, gate_opt = pl.pallas_call(
        _gate_kernel,
        out_shape=(jax.ShapeDtypeStruct((B, Cs), jnp.float32),
                   jax.ShapeDtypeStruct((B, Co), jnp.float32)),
    )(mean_sar, mean_opt,
      w_sq_sar, w_sq_opt, params["b_squeeze"],
      params["w_sar"], params["b_sar"],
      params["w_optical"], params["b_optical"])

    # 3) Streaming elementwise gating (read + write pass).
    sar_o = _apply_gate(sar_f, gate_sar.reshape(B, 1, Cs), t_s)
    opt_o = _apply_gate(opt_f, gate_opt.reshape(B, 1, Co), t_o)

    return (sar_o.transpose(0, 2, 1).reshape(B, Cs, H, W),
            opt_o.transpose(0, 2, 1).reshape(B, Co, Ho, Wo))


# ---------------------------------------------------------------------------
# Params + pure-JAX reference
# ---------------------------------------------------------------------------

def init_params(key, dim_sar, dim_optical, ratio):
    """Deterministic synthetic init; mimics nn.Linear's uniform(-1/sqrt(in), 1/sqrt(in)).

    Weights stored (in, out) — the transpose of PyTorch's convention — so y = x @ W + b.
    """
    dim = dim_sar + dim_optical
    dim_out = int(2 * dim / ratio)
    ks = jax.random.split(key, 6)

    def lin(kw, kb, fan_in, fan_out):
        bound = 1.0 / np.sqrt(fan_in)
        w = jax.random.uniform(kw, (fan_in, fan_out), jnp.float32, -bound, bound)
        b = jax.random.uniform(kb, (1, fan_out), jnp.float32, -bound, bound)
        return w, b

    w_sq, b_sq = lin(ks[0], ks[1], dim, dim_out)
    w_sar, b_sar = lin(ks[2], ks[3], dim_out, dim_sar)
    w_opt, b_opt = lin(ks[4], ks[5], dim_out, dim_optical)
    return {
        "w_squeeze": w_sq, "b_squeeze": b_sq,
        "w_sar": w_sar, "b_sar": b_sar,
        "w_optical": w_opt, "b_optical": b_opt,
    }


def mmtm_reference(sar, optical, params):
    """Pure-JAX reference of the PyTorch forward (mode == 'fusion')."""
    B, Cs = sar.shape[:2]
    Co = optical.shape[1]
    sq_sar = jnp.mean(sar.reshape(B, Cs, -1), axis=-1)
    sq_opt = jnp.mean(optical.reshape(B, Co, -1), axis=-1)
    squeeze = jnp.concatenate([sq_sar, sq_opt], axis=1)
    excit = jnp.maximum(squeeze @ params["w_squeeze"] + params["b_squeeze"], 0.0)
    g_sar = jax.nn.sigmoid(excit @ params["w_sar"] + params["b_sar"])
    g_opt = jax.nn.sigmoid(excit @ params["w_optical"] + params["b_optical"])
    return (sar * g_sar[:, :, None, None], optical * g_opt[:, :, None, None])


# ---------------------------------------------------------------------------
# Self-test
# ---------------------------------------------------------------------------

if __name__ == "__main__":
    B, dim_sar, dim_optical, H, W, ratio = 2, 4, 4, 16, 16, 4

    key = jax.random.PRNGKey(0)
    k_sar, k_opt, k_params = jax.random.split(key, 3)
    sar = jax.random.normal(k_sar, (B, dim_sar, H, W), jnp.float32)
    optical = jax.random.normal(k_opt, (B, dim_optical, H, W), jnp.float32)
    params = init_params(k_params, dim_sar, dim_optical, ratio)

    sar_out, opt_out = mmtm_forward(sar, optical, params)
    jax.block_until_ready((sar_out, opt_out))

    ref_sar, ref_opt = mmtm_reference(sar, optical, params)
    np.testing.assert_allclose(np.asarray(sar_out), np.asarray(ref_sar),
                               rtol=1e-5, atol=1e-5)
    np.testing.assert_allclose(np.asarray(opt_out), np.asarray(ref_opt),
                               rtol=1e-5, atol=1e-5)
    print("KERNEL_OK")
</pallas_src>

<mosaic_0001>
module attributes {stable_mosaic.version = 11 : i64} {
  func.func @_squeeze_kernel(%arg0: i32, %arg1: i32, %arg2: memref<1x256x4xf32, #tpu.memory_space<vmem>>, %arg3: memref<1x1x4xf32, #tpu.memory_space<vmem>>) attributes {dimension_semantics = [#tpu.dimension_semantics<parallel>, #tpu.dimension_semantics<arbitrary>], iteration_bounds = array<i64: 2, 1>, scalar_prefetch = 0 : i64, scratch_operands = 0 : i64, tpu.core_type = #tpu.core_type<tc>, window_params = [{transform_indices = @transform_0, window_bounds = array<i64: 1, 256, 4>}, {transform_indices = @transform_1, window_bounds = array<i64: 1, 1, 4>}]} {
    %c0_i32 = arith.constant 0 : i32
    %0 = arith.cmpi eq, %arg1, %c0_i32 : i32
    %1 = arith.extui %0 : i1 to i32
    %c0_i32_0 = arith.constant 0 : i32
    %2 = arith.cmpi ne, %1, %c0_i32_0 : i32
    scf.if %2 {
      %cst_11 = arith.constant 0.000000e+00 : f32
      %12 = vector.broadcast %cst_11 : f32 to vector<1x1x4xf32>
      %c0_12 = arith.constant 0 : index
      %c0_13 = arith.constant 0 : index
      %c0_14 = arith.constant 0 : index
      %13 = vector.load %arg3[%c0_12, %c0_13, %c0_14] : memref<1x1x4xf32, #tpu.memory_space<vmem>>, vector<1x1x4xf32>
      tpu.vector_store %arg3[%c0_12, %c0_13, %c0_14], %12 {strides = array<i32>} : memref<1x1x4xf32, #tpu.memory_space<vmem>>, vector<1x1x4xf32>,
    } else {
    }
    %c0 = arith.constant 0 : index
    %c0_1 = arith.constant 0 : index
    %c0_2 = arith.constant 0 : index
    %3 = vector.load %arg3[%c0, %c0_1, %c0_2] : memref<1x1x4xf32, #tpu.memory_space<vmem>>, vector<1x1x4xf32>
    %c0_3 = arith.constant 0 : index
    %c0_4 = arith.constant 0 : index
    %c0_5 = arith.constant 0 : index
    %4 = vector.load %arg2[%c0_3, %c0_4, %c0_5] : memref<1x256x4xf32, #tpu.memory_space<vmem>>, vector<1x256x4xf32>
    %cst = arith.constant dense<0.000000e+00> : vector<1x4xf32>
    %5 = vector.multi_reduction <add>, %4, %cst [1] : vector<1x256x4xf32> to vector<1x4xf32>
    %6 = vector.shape_cast %5 : vector<1x4xf32> to vector<1x1x4xf32>
    %7 = arith.addf %3, %6 : vector<1x1x4xf32>
    %c0_6 = arith.constant 0 : index
    %c0_7 = arith.constant 0 : index
    %c0_8 = arith.constant 0 : index
    %8 = vector.load %arg3[%c0_6, %c0_7, %c0_8] : memref<1x1x4xf32, #tpu.memory_space<vmem>>, vector<1x1x4xf32>
    tpu.vector_store %arg3[%c0_6, %c0_7, %c0_8], %7 {strides = array<i32>} : memref<1x1x4xf32, #tpu.memory_space<vmem>>, vector<1x1x4xf32>,
    %c0_i32_9 = arith.constant 0 : i32
    %9 = arith.cmpi eq, %arg1, %c0_i32_9 : i32
    %10 = arith.extui %9 : i1 to i32
    %c0_i32_10 = arith.constant 0 : i32
    %11 = arith.cmpi ne, %10, %c0_i32_10 : i32
    scf.if %11 {
      %c0_11 = arith.constant 0 : index
      %c0_12 = arith.constant 0 : index
      %c0_13 = arith.constant 0 : index
      %12 = vector.load %arg3[%c0_11, %c0_12, %c0_13] : memref<1x1x4xf32, #tpu.memory_space<vmem>>, vector<1x1x4xf32>
      %cst_14 = arith.constant 3.906250e-03 : f32
      %13 = vector.broadcast %cst_14 : f32 to vector<1x1x4xf32>
      %14 = arith.mulf %12, %13 : vector<1x1x4xf32>
      %c0_15 = arith.constant 0 : index
      %c0_16 = arith.constant 0 : index
      %c0_17 = arith.constant 0 : index
      %15 = vector.load %arg3[%c0_15, %c0_16, %c0_17] : memref<1x1x4xf32, #tpu.memory_space<vmem>>, vector<1x1x4xf32>
      tpu.vector_store %arg3[%c0_15, %c0_16, %c0_17], %14 {strides = array<i32>} : memref<1x1x4xf32, #tpu.memory_space<vmem>>, vector<1x1x4xf32>,
    } else {
    }
    return
  }
  func.func @transform_0(%arg0: i32, %arg1: i32) -> (i32, i32, i32) {
    %c0_i32 = arith.constant 0 : i32
    %c0_i32_0 = arith.constant 0 : i32
    return %arg0, %arg1, %c0_i32 : i32, i32, i32
  }
  func.func @transform_1(%arg0: i32, %arg1: i32) -> (i32, i32, i32) {
    %c0_i32 = arith.constant 0 : i32
    %c0_i32_0 = arith.constant 0 : i32
    %c0_i32_1 = arith.constant 0 : i32
    return %arg0, %c0_i32, %c0_i32_0 : i32, i32, i32
  }
}

</mosaic_0001>

<bundles_post_ra>
// kernel: tpu_custom_call.1
= control target key start
LH: loop header
LB: loop body
LE: loop exit
PB: predicated region body
PF: predicated region fallthrough
CT: control target
= control target key end

     0   :  { %6 = vsyncpa [#allocation3], 0  ;;  %s694_s0 = inlined_call_operand.vmem [shape: f32[2,256,4], index: 0, kind: input, shape index: {}]   ;;  %s695_s1 = inlined_call_operand.hbm [shape: f32[2,1,4], index: 1, kind: output, shape index: {}]  }
   0x1   :  { %8 = vsyncpa [#allocation3 + $0x1], 0  ;;  %s501_s6 = smov 0   ;;  %s503_s7 = smov 0  }
   0x2   :  { %s505_s8 = smov 0   ;;  %s507_s9 = smov 0  }
   0x3   :  { %s509_s10 = smov 0   ;;  %s511_s11 = smov 0  }
   0x4 LB: > { %s342_s12 = sadd.s32 4294967295, %s487_s11   ;;  %s343_s13 = sadd.s32 4294967294, %s487_s11   ;;  %s487_s11 = sphi %s511_s11, %s14_s11   ;;  %s483_s10 = sphi %s509_s10, %s702_s10   ;;  %s479_s9 = sphi %s507_s9, %s701_s9   ;;  %s475_s8 = sphi %s505_s8, %s700_s8   ;;  %s471_s7 = sphi %s503_s7, %s699_s7   ;;  %s467_s6 = sphi %s501_s6, %s698_s6  }
   0x5   : > { %s26_s14 = sadd.s32 1, %s483_s10  ;;  %s61_s15 = sadd.s32 1, %s475_s8 }
   0x6   : > { %p28_p0 = scmp.ge.s32.totalorder %s26_s14, 2  ;;  %p71_p1 = scmp.ne.s32.totalorder %s475_s8, %s471_s7 }
   0x7   : > { %p72_p2 = scmp.eq.s32.totalorder %s342_s12, 1  ;;  %p77_p3 = scmp.ne.s32.totalorder %s471_s7, %s467_s6 }
   0x8   : > { %s704_s14 = smov (%p28_p0, %s26_s14), 0  ;;  %p78_p5 = scmp.eq.s32.totalorder %s343_s13, 1 }
   0x9   : > { %p541_p4 = por %p72_p2, %p71_p1  ;;  %s58_s17 = ssub.s32 %s483_s10, %s704_s14 }
   0xa   : > { %p346_p6 = scmp.ge.s32.totalorder %s487_s11, 1  ;;  %p59_p7 = scmp.eq.s32.totalorder %s58_s17, 0 }
   0xb   : > { %p548_p8 = por %p78_p5, %p77_p3  ;;  %p109_p9 = scmp.lt.s32.totalorder %s487_s11, 3 }
   0xc   : > { %s554_s19 = scalar_select %p59_p7, %s475_s8, %s61_s15  }
   0xd   : > { %p110_p10 = pnand %p346_p6, %p109_p9 }
   0xe   : > { %s130_s20 = sand.u32 (!%p110_p10), 1, %s471_s7   ;;  %vm146_vm0 = vcmask (!%p110_p10), 24576   ;;  %p133_p11 = scmp.lt.s32.totalorder (!%p110_p10), %s479_s9, 1  ;;  %v489_v0 = vmov (!%p110_p10), 0.0   ;;  %vm181_vm1 = vcmask (!%p110_p10), 31744  }
   0xf   : > { %113 = sbr.rel (%p110_p10) target bundleno = 128 (0x80), region = 24  ;;  %s560_s21 = scalar_lea.vmem (!%p110_p10), [#allocation2], %s130_s20 }
  0x10   : > { %147 = vst.msk [vmem:[%s560_s21] sm:$0x1] (!%p110_p10), %vm146_vm0, %v489_v0  ;;  %s349_s27 = sshll.u32 (!%p110_p10), %s479_s9, 4  ;;  %s273_s28 = sshll.u32 (!%p110_p10), %s560_s21, 4  ;;  %s645_s28 = int_to_ptr.vmem [resolvable:$true] %s273_s28 }
  0x11   : > { %s643_s2 = scalar_lea.hbm (!%p110_p10), %s695_s1, %s349_s27  ;;  %s261_s3 = scalar_lea.sflag (!%p110_p10), [#allocation3], %s130_s20 }
  0x12   : > { %s409_s4 = scalar_lea.vmem (!%p110_p10), %s645_s28, 16  ;;  %s490_s5 = smov (!%p110_p10), [#allocation2]  }
  0x13   : > { %p410_p12 = scmp.ne.s32.totalorder (!%p110_p10), %s645_s28, %s409_s4 }
  0x15   : > { %p411_p13 = pnand (!%p110_p10), %p410_p12, %p541_p4 }
  0x16   : > { %s134_s22 = scalar_select %p133_p11, %s479_s9, 1 }
  0x17   : > { %p412_p0 = pneg %p411_p13  ;;  %s413_s9 = sshll.u32 %s490_s5, 4  ;;  %s414_s9 = int_to_ptr.vmem [resolvable:$false] %s413_s9 }
  0x18   : > { %s352_s23 = sshll.u32 %s134_s22, 8  ;;  %s415_s12 = scalar_lea.vmem %s414_s9, 32 }
  0x19   : > { %s568_s26 = scalar_lea.vmem %s694_s0, %s352_s23  ;;  %p416_p1 = scmp.lt.s32.totalorder %s645_s28, %s414_s9 }
  0x1a   : > { %v149_v1 = vld [vmem:[%s568_s26] sm:$0xff]  ;;  %v150_v2 = vld [vmem:[%s568_s26 + $0x8] sm:$0xff]  ;;  %v151_v3 = vld [vmem:[%s568_s26 + $0x10] sm:$0xff]  ;;  %p417_p2 = scmp.lt.s32.totalorder %s415_s12, %s409_s4 }
  0x1b   : > { %v152_v4 = vld [vmem:[%s568_s26 + $0x18] sm:$0xff]  ;;  %v182_v5 = vsel %vm181_vm1, %v149_v1, 0.0  ;;  %v183_v6 = vsel %vm181_vm1, %v150_v2, 0.0  ;;  %v185_v7 = vsel %vm181_vm1, %v151_v3, 0.0  ;;  %v153_v8 = vld [vmem:[%s568_s26 + $0x20] sm:$0xff]  ;;  %v154_v11 = vld [vmem:[%s568_s26 + $0x28] sm:$0xff] }
  0x1c   : > { %v184_v9 = vadd.f32 %v183_v6, %v182_v5  ;;  %v187_v10 = vsel %vm181_vm1, %v152_v4, 0.0  ;;  %v189_v13 = vsel %vm181_vm1, %v153_v8, 0.0  ;;  %v155_v14 = vld [vmem:[%s568_s26 + $0x30] sm:$0xff]  ;;  %v191_v16 = vsel %vm181_vm1, %v154_v11, 0.0  ;;  %v156_v17 = vld [vmem:[%s568_s26 + $0x38] sm:$0xff]  ;;  %v157_v20 = vld [vmem:[%s568_s26 + $0x40] sm:$0xff]  ;;  %p418_p3 = por %p417_p2, %p416_p1 }
  0x1d   : > { %v193_v19 = vsel %vm181_vm1, %v155_v14, 0.0  ;;  %v195_v22 = vsel %vm181_vm1, %v156_v17, 0.0  ;;  %v158_v23 = vld [vmem:[%s568_s26 + $0x48] sm:$0xff]  ;;  %v197_v25 = vsel %vm181_vm1, %v157_v20, 0.0  ;;  %v159_v26 = vld [vmem:[%s568_s26 + $0x50] sm:$0xff]  ;;  %v160_v29 = vld [vmem:[%s568_s26 + $0x58] sm:$0xff] }
  0x1e   : > { %v186_v12 = vadd.f32 %v185_v7, %v184_v9  ;;  %v199_v28 = vsel %vm181_vm1, %v158_v23, 0.0  ;;  %v201_v31 = vsel %vm181_vm1, %v159_v26, 0.0  ;;  %v161_v32 = vld [vmem:[%s568_s26 + $0x60] sm:$0xff]  ;;  %v203_v34 = vsel %vm181_vm1, %v160_v29, 0.0  ;;  %v162_v35 = vld [vmem:[%s568_s26 + $0x68] sm:$0xff]  ;;  %v163_v38 = vld [vmem:[%s568_s26 + $0x70] sm:$0xff]  ;;  %p419_p5 = pnand %p418_p3, %p412_p0 }
  0x1f   : > { %v205_v37 = vsel %vm181_vm1, %v161_v32, 0.0  ;;  %v207_v40 = vsel %vm181_vm1, %v162_v35, 0.0  ;;  %v164_v41 = vld [vmem:[%s568_s26 + $0x78] sm:$0xff]  ;;  %v209_v43 = vsel %vm181_vm1, %v163_v38, 0.0  ;;  %v165_v44 = vld [vmem:[%s568_s26 + $0x80] sm:$0xff]  ;;  %v166_v47 = vld [vmem:[%s568_s26 + $0x88] sm:$0xff] }
  0x20   : > { %v188_v15 = vadd.f32 %v187_v10, %v186_v12  ;;  %v211_v46 = vsel %vm181_vm1, %v164_v41, 0.0  ;;  %v213_v49 = vsel %vm181_vm1, %v165_v44, 0.0  ;;  %v167_v50 = vld [vmem:[%s568_s26 + $0x90] sm:$0xff]  ;;  %v215_v52 = vsel %vm181_vm1, %v166_v47, 0.0  ;;  %v168_v53 = vld [vmem:[%s568_s26 + $0x98] sm:$0xff]  ;;  %v169_v56 = vld [vmem:[%s568_s26 + $0xa0] sm:$0xff] }
  0x21   : > { %v217_v55 = vsel %vm181_vm1, %v167_v50, 0.0  ;;  %v219_v58 = vsel %vm181_vm1, %v168_v53, 0.0  ;;  %v170_v59 = vld [vmem:[%s568_s26 + $0xa8] sm:$0xff]  ;;  %v221_v61 = vsel %vm181_vm1, %v169_v56, 0.0  ;;  %v171_v62 = vld [vmem:[%s568_s26 + $0xb0] sm:$0xff]  ;;  %v172_v1 = vld [vmem:[%s568_s26 + $0xb8] sm:$0xff] }
  0x22   : > { %v190_v18 = vadd.f32 %v189_v13, %v188_v15  ;;  %v223_v0 = vsel %vm181_vm1, %v170_v59, 0.0  ;;  %v225_v3 = vsel %vm181_vm1, %v171_v62, 0.0  ;;  %v173_v4 = vld [vmem:[%s568_s26 + $0xc0] sm:$0xff]  ;;  %v227_v6 = vsel %vm181_vm1, %v172_v1, 0.0  ;;  %v174_v7 = vld [vmem:[%s568_s26 + $0xc8] sm:$0xff]  ;;  %v175_v10 = vld [vmem:[%s568_s26 + $0xd0] sm:$0xff] }
  0x23   : > { %v229_v9 = vsel %vm181_vm1, %v173_v4, 0.0  ;;  %v231_v12 = vsel %vm181_vm1, %v174_v7, 0.0  ;;  %v176_v13 = vld [vmem:[%s568_s26 + $0xd8] sm:$0xff]  ;;  %v233_v15 = vsel %vm181_vm1, %v175_v10, 0.0 }
  0x24   : > { %v192_v21 = vadd.f32 %v191_v16, %v190_v18  ;;  %v177_v16 = vld [vmem:[%s568_s26 + $0xe0] sm:$0xff]  ;;  %v235_v18 = vsel %vm181_vm1, %v176_v13, 0.0 }
  0x26   : > { %v194_v24 = vadd.f32 %v193_v19, %v192_v21  ;;  %v178_v19 = vld [vmem:[%s568_s26 + $0xe8] sm:$0xff]  ;;  %v237_v21 = vsel %vm181_vm1, %v177_v16, 0.0 }
  0x28   : > { %v196_v27 = vadd.f32 %v195_v22, %v194_v24  ;;  %v179_v22 = vld [vmem:[%s568_s26 + $0xf0] sm:$0xff]  ;;  %v239_v24 = vsel %vm181_vm1, %v178_v19, 0.0 }
  0x2a   : > { %v198_v30 = vadd.f32 %v197_v25, %v196_v27  ;;  %v180_v25 = vld [vmem:[%s568_s26 + $0xf8] sm:$0xff]  ;;  %v241_v27 = vsel %vm181_vm1, %v179_v22, 0.0 }
  0x2b   : > { %v243_v29 = vsel %vm181_vm1, %v180_v25, 0.0 }
  0x2c   : > { %v200_v33 = vadd.f32 %v199_v28, %v198_v30 }
  0x2e   : > { %v202_v36 = vadd.f32 %v201_v31, %v200_v33 }
  0x30   : > { %v204_v39 = vadd.f32 %v203_v34, %v202_v36 }
  0x32   : > { %v206_v42 = vadd.f32 %v205_v37, %v204_v39  ;;  %v148_v37 = vld [vmem:[%s560_s21] sm:$0x1] }
  0x34   : > { %v208_v45 = vadd.f32 %v207_v40, %v206_v42 }
  0x36   : > { %v210_v48 = vadd.f32 %v209_v43, %v208_v45 }
  0x38   : > { %v212_v51 = vadd.f32 %v211_v46, %v210_v48 }
  0x3a   : > { %v214_v54 = vadd.f32 %v213_v49, %v212_v51 }
  0x3c   : > { %v216_v57 = vadd.f32 %v215_v52, %v214_v54 }
  0x3e   : > { %v218_v60 = vadd.f32 %v217_v55, %v216_v57 }
  0x40   : > { %v220_v63 = vadd.f32 %v219_v58, %v218_v60 }
  0x42   : > { %v222_v2 = vadd.f32 %v221_v61, %v220_v63 }
  0x44   : > { %v224_v5 = vadd.f32 %v223_v0, %v222_v2 }
  0x46   : > { %v226_v8 = vadd.f32 %v225_v3, %v224_v5 }
  0x48   : > { %v228_v11 = vadd.f32 %v227_v6, %v226_v8 }
  0x4a   : > { %v230_v14 = vadd.f32 %v229_v9, %v228_v11 }
  0x4c   : > { %v232_v17 = vadd.f32 %v231_v12, %v230_v14 }
  0x4e   : > { %v234_v20 = vadd.f32 %v233_v15, %v232_v17 }
  0x50   : > { %v236_v23 = vadd.f32 %v235_v18, %v234_v20 }
  0x52   : > { %v238_v26 = vadd.f32 %v237_v21, %v236_v23 }
  0x54   : > { %v240_v28 = vadd.f32 %v239_v24, %v238_v26 }
  0x56   : > { %v242_v30 = vadd.f32 %v241_v27, %v240_v28 }
  0x58   : > { %v244_v31 = vadd.f32 %v243_v29, %v242_v30 }
  0x5a   : > { %v245_v32 = vrot.slane %v244_v31, 4 }
  0x5c   : > { %v246_v33 = vadd.f32 %v245_v32, %v244_v31 }
  0x5e   : > { %v247_v34 = vrot.slane %v246_v33, 2 }
  0x60   : > { %v248_v35 = vadd.f32 %v247_v34, %v246_v33 }
  0x62   : > { %v249_v36 = vrot.slane %v248_v35, 1 }
  0x64   : > { %v250_v38 = vadd.f32 %v249_v36, %v248_v35 }
  0x66   : > { %v251_v39 = vadd.f32 %v250_v38, %v148_v37 }
  0x68   : > { %253 = vst.msk [vmem:[%s560_s21] sm:$0x1] %vm146_vm0, %v251_v39 }
  0x6f   : > { %v257_v40 = vld [vmem:[%s560_s21] sm:$0x1] }
  0x70   : > { %v258_v41 = vmul.f32 0.00390625, %v257_v40 }
  0x72   : > { %259 = vst.msk [vmem:[%s560_s21] sm:$0x1] %vm146_vm0, %v258_v41 }
  0x73   : > { %422 = shalt.err (!%p419_p5)
}
  0x74   : > { %s423_s13 = scalar_lea.hbm %s643_s2, 16  ;;  %s427_s20 = scalar_lea.hbm %s695_s1, 32 }
  0x75   : > { %p424_p6 = scmp.ne.s32.totalorder %s643_s2, %s423_s13  ;;  %p428_p10 = scmp.lt.u32.totalorder %s643_s2, %s695_s1 }
  0x76   : > { %p429_p11 = scmp.lt.u32.totalorder %s427_s20, %s423_s13  ;;  %p431_p13 = scmp.lt.u32.totalorder %s423_s13, %s643_s2 }
  0x77   : > { %p425_p7 = pnand %p424_p6, %p541_p4 }
  0x78   : > { %p430_p12 = por %p429_p11, %p428_p10 }
  0x79   : > { %p426_p9 = pneg %p425_p7 }
  0x7a   : > { %p432_p0 = por %p431_p13, %p430_p12 }
  0x7c   : > { %p433_p1 = pnand %p432_p0, %p426_p9 }
  0x7e   : > { %436 = shalt.err (!%p433_p1)
}
  0x7f   : > { %353 = dma.vmem_to_hbm [thread:$0]  (%p541_p4), %s645_s28, 16, %s643_s2, %s261_s3  }
  0x80 PF: > { %p359_p2 = scmp.ge.s32.totalorder %s487_s11, 2  ;;  %s285_s23 = sand.u32 1, %s467_s6  }
  0x81   : > { %s286_s24 = scalar_lea.sflag [#allocation3], %s285_s23 }
  0x82   : > { %p356_p3 = pnand %p359_p2, %p548_p8 }
  0x84   : > { %462 = dma.done.wait (!%p356_p3), %s286_s24, 16  }
  0x85   : > { %464 = vsyncadd (!%p356_p3), %s286_s24, 4294967280  ;;  %s14_s11 = sadd.s32 1, %s487_s11   ;;  %s698_s6 = smov %s471_s7 }
  0x86   : > { %p11_p5 = scmp.ge.s32.totalorder %s14_s11, 4   ;;  %s699_s7 = smov %s475_s8 }
  0x87   : > { %s700_s8 = smov %s554_s19  ;;  %s701_s9 = smov %s483_s10 }
  0x88   : > { %s702_s10 = smov %s704_s14  ;;  %13 = sbr.rel (!%p11_p5) target bundleno = 4 (0x4), region = 67 }
  0x8f   :  { %290 = vsyncpa [#allocation3], 1 }
  0x90   :  { %292 = vsyncpa [#allocation3 + $0x1], 1 }

</bundles_post_ra>
